<compile_context>
chip_gen: v7x
topology: tpu7x:2x2x1
jax: 0.10.0
libtpu: 0.0.40
codegen_flags: <defaults>
</compile_context>

<pallas_src>
from functools import partial

import jax
import jax.numpy as jnp
from jax import lax
from jax.experimental import pallas as pl
from jax.experimental.pallas import tpu as pltpu

BN_EPS = 1e-5


def _make_divisible(v, divisor, min_value=None):
    if min_value is None:
        min_value = divisor
    new_v = max(min_value, int(v + divisor / 2) // divisor * divisor)
    if new_v < 0.9 * v:
        new_v += divisor
    return new_v


# ---------------------------------------------------------------------------
# Fused kernel: one invocation handles the whole batch.
# Activation layout: rows = batch*channel (sublanes), lanes = flattened H*W.
# ---------------------------------------------------------------------------
def i2r_ghost_kernel(x_ref, w1_ref, b1_ref, wp_ref, b2_ref, we_ref, b3_ref,
                     w2_ref, b4_ref, o_ref, buf_ref, *, N, C, H, W, G, OUP, GHO):
    f32 = jnp.float32
    HW = H * W
    GP = W + 1                      # zero-guard (halo) width on each side
    R = N * C                       # batch*channel rows (FINAL == C here)

    # Column masks handle the horizontal image boundary of the 3x3 taps; the
    # vertical boundary is handled by the zero guard columns of buf_ref.
    col = lax.broadcasted_iota(jnp.int32, (1, HW), 1) % W
    mask_l = (col >= 1).astype(f32)          # taps with dw = -1
    mask_r = (col <= W - 2).astype(f32)      # taps with dw = +1

    def dwconv(w, b):
        # Depthwise 3x3 over every row of buf_ref's interior, all rows at
        # once.  Each tap is a single lane-dense (R, HW) slice load.
        acc = None
        for t in range(9):
            dh, dw = t // 3 - 1, t % 3 - 1
            tap = buf_ref[:, pl.ds(GP + dh * W + dw, HW)]
            if dw == -1:
                tap = tap * mask_l
            elif dw == 1:
                tap = tap * mask_r
            term = w[:, t:t + 1] * tap
            acc = term if acc is None else acc + term
        return acc + b

    # Zero only the guard columns (once per call); interiors are always fully
    # overwritten before being read.
    buf_ref[:, pl.ds(0, GP)] = jnp.zeros((R, GP), f32)
    buf_ref[:, pl.ds(GP + HW, GP)] = jnp.zeros((R, GP), f32)

    x = x_ref[...].astype(f32)

    # Stage 1: depthwise 3x3 (+ folded BN1) + ReLU, all batch*channels at once.
    buf_ref[:, pl.ds(GP, HW)] = x
    x1 = jnp.maximum(dwconv(w1_ref[...], b1_ref[...]), 0.0)

    # Stages 2-3: both 1x1 convs as single matmuls over the whole slab.  The
    # weights are block-diagonal over the batch (built in the wrapper); the
    # project weights already zero out the ghost input channels.
    x2 = jnp.dot(wp_ref[...], x1, preferred_element_type=f32,
                 precision=lax.Precision.HIGHEST) + b2_ref[...]
    x3 = jnp.maximum(
        jnp.dot(we_ref[...], x2, preferred_element_type=f32,
                precision=lax.Precision.HIGHEST) + b3_ref[...], 0.0)

    # Stage 4: ghost concat [x3, x1[:, G:]] written straight into the conv-2
    # staging buffer interior (guards stay zero).
    for n in range(N):
        buf_ref[pl.ds(n * C, GHO), pl.ds(GP, HW)] = x3[n * GHO:(n + 1) * GHO, :]
        if C - G > 0:
            buf_ref[pl.ds(n * C + GHO, C - G), pl.ds(GP, HW)] = \
                x1[n * C + G:(n + 1) * C, :]

    # Stage 5: depthwise 3x3 (+ folded BN4) + identity residual.  Residual is
    # the already-loaded, aligned, unpadded input.  One full lane-dense store.
    out = dwconv(w2_ref[...], b4_ref[...]) + x
    o_ref[...] = out.astype(o_ref.dtype)


# ---------------------------------------------------------------------------
# Wrapper: fold BN (inference) into conv weights, build batch-tiled /
# block-diagonal weight tables, launch a single fused kernel invocation.
# ---------------------------------------------------------------------------
def fold_bn(gamma, beta, mean, var):
    scale = gamma / jnp.sqrt(var + BN_EPS)
    return scale, beta - mean * scale


def i2r_ghost_block(x, params, *, ghost_idx_inp, oup, ghost_idx_oup):
    N, C, H, W = x.shape
    G, OUP, GHO = ghost_idx_inp, oup, ghost_idx_oup
    FINAL = GHO + (C - G)
    assert FINAL == C, "identity branch requires in_chs == out_chs"
    HW = H * W

    s1, b1 = fold_bn(*params["bn1"])
    s2, b2 = fold_bn(*params["bn2"])
    s3, b3 = fold_bn(*params["bn3"])
    s4, b4 = fold_bn(*params["bn4"])

    w1f = (params["dw1"][:, 0].reshape(C, 9) * s1[:, None]).astype(jnp.float32)
    wpf = (params["proj"][:, :, 0, 0] * s2[:, None]).astype(jnp.float32)   # (OUP, G)
    wef = (params["exp"][:, :, 0, 0] * s3[:, None]).astype(jnp.float32)    # (GHO, OUP)
    w2f = (params["dw2"][:, 0].reshape(FINAL, 9) * s4[:, None]).astype(jnp.float32)

    # Row n*C + c  <->  (batch n, channel c): tile per-channel tables over N.
    w1r = jnp.tile(w1f, (N, 1))                                  # (N*C, 9)
    w2r = jnp.tile(w2f, (N, 1))                                  # (N*FINAL, 9)
    b1r = jnp.tile(b1.astype(jnp.float32), N)[:, None]
    b2r = jnp.tile(b2.astype(jnp.float32), N)[:, None]
    b3r = jnp.tile(b3.astype(jnp.float32), N)[:, None]
    b4r = jnp.tile(b4.astype(jnp.float32), N)[:, None]

    # Block-diagonal-over-batch 1x1 weights so both pointwise convs become
    # single matmuls over the whole (batch*channel, pixel) slab.  The project
    # weights are zero on the ghost input channels (columns G..C-1).
    wp_pad = jnp.zeros((OUP, C), jnp.float32).at[:, :G].set(wpf)
    wp_big = jnp.kron(jnp.eye(N, dtype=jnp.float32), wp_pad)     # (N*OUP, N*C)
    we_big = jnp.kron(jnp.eye(N, dtype=jnp.float32), wef)        # (N*GHO, N*OUP)

    # Free reshape: (N, C, H, W) -> (N*C, H*W).  H*W = 256 = 2x128 lanes.
    x2d = x.reshape(N * C, HW)

    GP = W + 1
    BUFW = HW + 2 * GP

    # Total VMEM: ~40 KiB (input + output + staging buffer + weights) -> far
    # under the scoped limit on every generation (incl. v7x's 64 MiB).
    vmem = pl.BlockSpec(memory_space=pltpu.MemorySpace.VMEM)
    out2d = pl.pallas_call(
        partial(i2r_ghost_kernel, N=N, C=C, H=H, W=W, G=G, OUP=OUP, GHO=GHO),
        out_shape=jax.ShapeDtypeStruct((N * FINAL, HW), x.dtype),
        in_specs=[vmem] * 9,
        out_specs=vmem,
        scratch_shapes=[pltpu.VMEM((N * FINAL, BUFW), jnp.float32)],
    )(x2d, w1r, b1r, wp_big, b2r, we_big, b3r, w2r, b4r)

    return out2d.reshape(N, FINAL, H, W)


# ---------------------------------------------------------------------------
# Pure-JAX reference (unfolded BN, lax.conv) for correctness checking.
# ---------------------------------------------------------------------------
def i2r_ghost_block_ref(x, params, *, ghost_idx_inp):
    def bn(t, gamma, beta, mean, var):
        inv = 1.0 / jnp.sqrt(var + BN_EPS)
        return ((t - mean[None, :, None, None]) * inv[None, :, None, None]
                * gamma[None, :, None, None] + beta[None, :, None, None])

    def dw_conv(t, w):
        return lax.conv_general_dilated(
            t, w, window_strides=(1, 1), padding=((1, 1), (1, 1)),
            dimension_numbers=("NCHW", "OIHW", "NCHW"),
            feature_group_count=t.shape[1])

    def pw_conv(t, w):
        return lax.conv_general_dilated(
            t, w, window_strides=(1, 1), padding="VALID",
            dimension_numbers=("NCHW", "OIHW", "NCHW"))

    relu = lambda t: jnp.maximum(t, 0.0)

    h = relu(bn(dw_conv(x, params["dw1"]), *params["bn1"]))
    ghost = h[:, ghost_idx_inp:]
    h2 = bn(pw_conv(h[:, :ghost_idx_inp], params["proj"]), *params["bn2"])
    h3 = relu(bn(pw_conv(h2, params["exp"]), *params["bn3"]))
    h4 = jnp.concatenate([h3, ghost], axis=1)
    h5 = bn(dw_conv(h4, params["dw2"]), *params["bn4"])
    return h5 + x


def _bn_params(key, c):
    k1, k2, k3, k4 = jax.random.split(key, 4)
    gamma = jax.random.uniform(k1, (c,), jnp.float32, 0.5, 1.5)
    beta = jax.random.normal(k2, (c,), jnp.float32) * 0.1
    mean = jax.random.normal(k3, (c,), jnp.float32) * 0.1
    var = jax.random.uniform(k4, (c,), jnp.float32, 0.5, 1.5)
    return gamma, beta, mean, var


if __name__ == "__main__":
    # Default I2RGhostBlock config -> identity branch:
    #   exp_ratio=1, stride=1, in_chs == out_chs, se_ratio=0, drop_connect=0.
    in_chs = out_chs = 4
    exp_ratio = 1.0
    split_ratio = 2

    oup = _make_divisible(int(in_chs // exp_ratio), 2)
    ghost_idx_inp = in_chs // split_ratio
    ghost_idx_oup = int(out_chs - ghost_idx_inp)

    key = jax.random.PRNGKey(0)
    ks = jax.random.split(key, 9)
    params = {
        "dw1": jax.random.normal(ks[0], (in_chs, 1, 3, 3), jnp.float32) * 0.2,
        "bn1": _bn_params(ks[1], in_chs),
        "proj": jax.random.normal(ks[2], (oup, ghost_idx_inp, 1, 1), jnp.float32) * 0.2,
        "bn2": _bn_params(ks[3], oup),
        "exp": jax.random.normal(ks[4], (ghost_idx_oup, oup, 1, 1), jnp.float32) * 0.2,
        "bn3": _bn_params(ks[5], ghost_idx_oup),
        "dw2": jax.random.normal(ks[6], (out_chs, 1, 3, 3), jnp.float32) * 0.2,
        "bn4": _bn_params(ks[7], out_chs),
    }

    N, H, W = 2, 16, 16
    x = jax.random.normal(ks[8], (N, in_chs, H, W), jnp.float32)

    out = i2r_ghost_block(x, params, ghost_idx_inp=ghost_idx_inp,
                          oup=oup, ghost_idx_oup=ghost_idx_oup)
    out = jax.block_until_ready(out)

    ref = i2r_ghost_block_ref(x, params, ghost_idx_inp=ghost_idx_inp)
    assert out.shape == (N, out_chs, H, W)
    assert out.dtype == x.dtype
    assert jnp.allclose(out, ref, atol=1e-4, rtol=1e-4), \
        "Pallas I2RGhostBlock mismatch vs reference"

    print("KERNEL_OK")
</pallas_src>

<mosaic_0001>
module attributes {stable_mosaic.version = 11 : i64} {
  func.func @i2r_ghost_kernel(%arg0: memref<8x256xf32, #tpu.memory_space<vmem>>, %arg1: memref<8x9xf32, #tpu.memory_space<vmem>>, %arg2: memref<8x1xf32, #tpu.memory_space<vmem>>, %arg3: memref<8x8xf32, #tpu.memory_space<vmem>>, %arg4: memref<8x1xf32, #tpu.memory_space<vmem>>, %arg5: memref<4x8xf32, #tpu.memory_space<vmem>>, %arg6: memref<4x1xf32, #tpu.memory_space<vmem>>, %arg7: memref<8x9xf32, #tpu.memory_space<vmem>>, %arg8: memref<8x1xf32, #tpu.memory_space<vmem>>, %arg9: memref<8x256xf32, #tpu.memory_space<vmem>>, %arg10: memref<8x290xf32, #tpu.memory_space<vmem>>) attributes {dimension_semantics = [], scalar_prefetch = 0 : i64, scratch_operands = 1 : i64, tpu.core_type = #tpu.core_type<tc>} {
    %0 = tpu.iota {dimensions = array<i32: 1>} : vector<1x256xi32>
    %c16_i32 = arith.constant 16 : i32
    %c0_i32 = arith.constant 0 : i32
    %1 = arith.cmpi eq, %c16_i32, %c0_i32 : i32
    %c1_i32 = arith.constant 1 : i32
    %2 = arith.select %1, %c1_i32, %c16_i32 : i32
    %3 = vector.broadcast %2 : i32 to vector<1x256xi32>
    %4 = arith.remsi %0, %3 : vector<1x256xi32>
    %c0_i32_0 = arith.constant 0 : i32
    %5 = vector.broadcast %c0_i32_0 : i32 to vector<1x256xi32>
    %6 = arith.cmpi ne, %4, %5 : vector<1x256xi32>
    %c0_i32_1 = arith.constant 0 : i32
    %7 = vector.broadcast %c0_i32_1 : i32 to vector<1x256xi32>
    %8 = arith.cmpi slt, %4, %7 : vector<1x256xi32>
    %c0_i32_2 = arith.constant 0 : i32
    %9 = arith.cmpi slt, %2, %c0_i32_2 : i32
    %10 = vector.broadcast %9 : i1 to vector<1x256xi1>
    %11 = vector.broadcast %10 : vector<1x256xi1> to vector<1x256xi1>
    %12 = arith.xori %8, %11 : vector<1x256xi1>
    %13 = arith.andi %12, %6 : vector<1x256xi1>
    %14 = vector.broadcast %2 : i32 to vector<1x256xi32>
    %15 = arith.addi %4, %14 : vector<1x256xi32>
    %16 = arith.select %13, %15, %4 : vector<1x256xi1>, vector<1x256xi32>
    %c1_i32_3 = arith.constant 1 : i32
    %17 = vector.broadcast %c1_i32_3 : i32 to vector<1x256xi32>
    %18 = arith.cmpi sge, %16, %17 : vector<1x256xi32>
    %19 = arith.extui %18 : vector<1x256xi1> to vector<1x256xi32>
    %20 = arith.sitofp %19 : vector<1x256xi32> to vector<1x256xf32>
    %c14_i32 = arith.constant 14 : i32
    %21 = vector.broadcast %c14_i32 : i32 to vector<1x256xi32>
    %22 = arith.cmpi sle, %16, %21 : vector<1x256xi32>
    %23 = arith.extui %22 : vector<1x256xi1> to vector<1x256xi32>
    %24 = arith.sitofp %23 : vector<1x256xi32> to vector<1x256xf32>
    %cst = arith.constant 0.000000e+00 : f32
    %25 = vector.broadcast %cst : f32 to vector<8x17xf32>
    %c0 = arith.constant 0 : index
    %c0_4 = arith.constant 0 : index
    %26 = vector.load %arg10[%c0, %c0_4] : memref<8x290xf32, #tpu.memory_space<vmem>>, vector<8x17xf32>
    tpu.vector_store %arg10[%c0, %c0_4], %25 {strides = array<i32>} : memref<8x290xf32, #tpu.memory_space<vmem>>, vector<8x17xf32>,
    %cst_5 = arith.constant 0.000000e+00 : f32
    %27 = vector.broadcast %cst_5 : f32 to vector<8x17xf32>
    %c0_6 = arith.constant 0 : index
    %c273 = arith.constant 273 : index
    %28 = vector.load %arg10[%c0_6, %c273] : memref<8x290xf32, #tpu.memory_space<vmem>>, vector<8x17xf32>
    tpu.vector_store %arg10[%c0_6, %c273], %27 {strides = array<i32>} : memref<8x290xf32, #tpu.memory_space<vmem>>, vector<8x17xf32>,
    %c0_7 = arith.constant 0 : index
    %c0_8 = arith.constant 0 : index
    %29 = vector.load %arg0[%c0_7, %c0_8] : memref<8x256xf32, #tpu.memory_space<vmem>>, vector<8x256xf32>
    %c0_9 = arith.constant 0 : index
    %c17 = arith.constant 17 : index
    %30 = vector.load %arg10[%c0_9, %c17] : memref<8x290xf32, #tpu.memory_space<vmem>>, vector<8x256xf32>
    tpu.vector_store %arg10[%c0_9, %c17], %29 {strides = array<i32>} : memref<8x290xf32, #tpu.memory_space<vmem>>, vector<8x256xf32>,
    %c0_10 = arith.constant 0 : index
    %c0_11 = arith.constant 0 : index
    %31 = vector.load %arg1[%c0_10, %c0_11] : memref<8x9xf32, #tpu.memory_space<vmem>>, vector<8x9xf32>
    %c0_12 = arith.constant 0 : index
    %c0_13 = arith.constant 0 : index
    %32 = vector.load %arg2[%c0_12, %c0_13] : memref<8x1xf32, #tpu.memory_space<vmem>>, vector<8x1xf32>
    %c0_14 = arith.constant 0 : index
    %c0_15 = arith.constant 0 : index
    %33 = vector.load %arg10[%c0_14, %c0_15] : memref<8x290xf32, #tpu.memory_space<vmem>>, vector<8x256xf32>
    %34 = vector.broadcast %20 : vector<1x256xf32> to vector<8x256xf32>
    %35 = arith.mulf %33, %34 : vector<8x256xf32>
    %36 = vector.extract_strided_slice %31 {offsets = [0, 0], sizes = [8, 1], strides = [1, 1]} : vector<8x9xf32> to vector<8x1xf32>
    %37 = vector.broadcast %36 : vector<8x1xf32> to vector<8x256xf32>
    %38 = arith.mulf %37, %35 : vector<8x256xf32>
    %c0_16 = arith.constant 0 : index
    %c1 = arith.constant 1 : index
    %39 = vector.load %arg10[%c0_16, %c1] : memref<8x290xf32, #tpu.memory_space<vmem>>, vector<8x256xf32>
    %40 = vector.extract_strided_slice %31 {offsets = [0, 1], sizes = [8, 1], strides = [1, 1]} : vector<8x9xf32> to vector<8x1xf32>
    %41 = vector.broadcast %40 : vector<8x1xf32> to vector<8x256xf32>
    %42 = arith.mulf %41, %39 : vector<8x256xf32>
    %43 = arith.addf %38, %42 : vector<8x256xf32>
    %c0_17 = arith.constant 0 : index
    %c2 = arith.constant 2 : index
    %44 = vector.load %arg10[%c0_17, %c2] : memref<8x290xf32, #tpu.memory_space<vmem>>, vector<8x256xf32>
    %45 = vector.broadcast %24 : vector<1x256xf32> to vector<8x256xf32>
    %46 = arith.mulf %44, %45 : vector<8x256xf32>
    %47 = vector.extract_strided_slice %31 {offsets = [0, 2], sizes = [8, 1], strides = [1, 1]} : vector<8x9xf32> to vector<8x1xf32>
    %48 = vector.broadcast %47 : vector<8x1xf32> to vector<8x256xf32>
    %49 = arith.mulf %48, %46 : vector<8x256xf32>
    %50 = arith.addf %43, %49 : vector<8x256xf32>
    %c0_18 = arith.constant 0 : index
    %c16 = arith.constant 16 : index
    %51 = vector.load %arg10[%c0_18, %c16] : memref<8x290xf32, #tpu.memory_space<vmem>>, vector<8x256xf32>
    %52 = vector.broadcast %20 : vector<1x256xf32> to vector<8x256xf32>
    %53 = arith.mulf %51, %52 : vector<8x256xf32>
    %54 = vector.extract_strided_slice %31 {offsets = [0, 3], sizes = [8, 1], strides = [1, 1]} : vector<8x9xf32> to vector<8x1xf32>
    %55 = vector.broadcast %54 : vector<8x1xf32> to vector<8x256xf32>
    %56 = arith.mulf %55, %53 : vector<8x256xf32>
    %57 = arith.addf %50, %56 : vector<8x256xf32>
    %c0_19 = arith.constant 0 : index
    %c17_20 = arith.constant 17 : index
    %58 = vector.load %arg10[%c0_19, %c17_20] : memref<8x290xf32, #tpu.memory_space<vmem>>, vector<8x256xf32>
    %59 = vector.extract_strided_slice %31 {offsets = [0, 4], sizes = [8, 1], strides = [1, 1]} : vector<8x9xf32> to vector<8x1xf32>
    %60 = vector.broadcast %59 : vector<8x1xf32> to vector<8x256xf32>
    %61 = arith.mulf %60, %58 : vector<8x256xf32>
    %62 = arith.addf %57, %61 : vector<8x256xf32>
    %c0_21 = arith.constant 0 : index
    %c18 = arith.constant 18 : index
    %63 = vector.load %arg10[%c0_21, %c18] : memref<8x290xf32, #tpu.memory_space<vmem>>, vector<8x256xf32>
    %64 = vector.broadcast %24 : vector<1x256xf32> to vector<8x256xf32>
    %65 = arith.mulf %63, %64 : vector<8x256xf32>
    %66 = vector.extract_strided_slice %31 {offsets = [0, 5], sizes = [8, 1], strides = [1, 1]} : vector<8x9xf32> to vector<8x1xf32>
    %67 = vector.broadcast %66 : vector<8x1xf32> to vector<8x256xf32>
    %68 = arith.mulf %67, %65 : vector<8x256xf32>
    %69 = arith.addf %62, %68 : vector<8x256xf32>
    %c0_22 = arith.constant 0 : index
    %c32 = arith.constant 32 : index
    %70 = vector.load %arg10[%c0_22, %c32] : memref<8x290xf32, #tpu.memory_space<vmem>>, vector<8x256xf32>
    %71 = vector.broadcast %20 : vector<1x256xf32> to vector<8x256xf32>
    %72 = arith.mulf %70, %71 : vector<8x256xf32>
    %73 = vector.extract_strided_slice %31 {offsets = [0, 6], sizes = [8, 1], strides = [1, 1]} : vector<8x9xf32> to vector<8x1xf32>
    %74 = vector.broadcast %73 : vector<8x1xf32> to vector<8x256xf32>
    %75 = arith.mulf %74, %72 : vector<8x256xf32>
    %76 = arith.addf %69, %75 : vector<8x256xf32>
    %c0_23 = arith.constant 0 : index
    %c33 = arith.constant 33 : index
    %77 = vector.load %arg10[%c0_23, %c33] : memref<8x290xf32, #tpu.memory_space<vmem>>, vector<8x256xf32>
    %78 = vector.extract_strided_slice %31 {offsets = [0, 7], sizes = [8, 1], strides = [1, 1]} : vector<8x9xf32> to vector<8x1xf32>
    %79 = vector.broadcast %78 : vector<8x1xf32> to vector<8x256xf32>
    %80 = arith.mulf %79, %77 : vector<8x256xf32>
    %81 = arith.addf %76, %80 : vector<8x256xf32>
    %c0_24 = arith.constant 0 : index
    %c34 = arith.constant 34 : index
    %82 = vector.load %arg10[%c0_24, %c34] : memref<8x290xf32, #tpu.memory_space<vmem>>, vector<8x256xf32>
    %83 = vector.broadcast %24 : vector<1x256xf32> to vector<8x256xf32>
    %84 = arith.mulf %82, %83 : vector<8x256xf32>
    %85 = vector.extract_strided_slice %31 {offsets = [0, 8], sizes = [8, 1], strides = [1, 1]} : vector<8x9xf32> to vector<8x1xf32>
    %86 = vector.broadcast %85 : vector<8x1xf32> to vector<8x256xf32>
    %87 = arith.mulf %86, %84 : vector<8x256xf32>
    %88 = arith.addf %81, %87 : vector<8x256xf32>
    %89 = vector.broadcast %32 : vector<8x1xf32> to vector<8x256xf32>
    %90 = arith.addf %88, %89 : vector<8x256xf32>
    %cst_25 = arith.constant 0.000000e+00 : f32
    %91 = vector.broadcast %cst_25 : f32 to vector<8x256xf32>
    %92 = arith.maximumf %90, %91 : vector<8x256xf32>
    %c0_26 = arith.constant 0 : index
    %c0_27 = arith.constant 0 : index
    %93 = vector.load %arg3[%c0_26, %c0_27] : memref<8x8xf32, #tpu.memory_space<vmem>>, vector<8x8xf32>
    %cst_28 = arith.constant dense<0.000000e+00> : vector<8x256xf32>
    %94 = tpu.matmul %93, %92, %cst_28 {dimension_numbers = #tpu.dot_dimension_numbers<[1], [0], [0], [1], [0, 0, 1, 1], [], []>, precision = #tpu.contract_precision<fp32>} : vector<8x8xf32>, vector<8x256xf32>, vector<8x256xf32> -> vector<8x256xf32>
    %c0_29 = arith.constant 0 : index
    %c0_30 = arith.constant 0 : index
    %95 = vector.load %arg4[%c0_29, %c0_30] : memref<8x1xf32, #tpu.memory_space<vmem>>, vector<8x1xf32>
    %96 = vector.broadcast %95 : vector<8x1xf32> to vector<8x256xf32>
    %97 = arith.addf %94, %96 : vector<8x256xf32>
    %c0_31 = arith.constant 0 : index
    %c0_32 = arith.constant 0 : index
    %98 = vector.load %arg5[%c0_31, %c0_32] : memref<4x8xf32, #tpu.memory_space<vmem>>, vector<4x8xf32>
    %cst_33 = arith.constant dense<0.000000e+00> : vector<4x256xf32>
    %99 = tpu.matmul %98, %97, %cst_33 {dimension_numbers = #tpu.dot_dimension_numbers<[1], [0], [0], [1], [0, 0, 1, 1], [], []>, precision = #tpu.contract_precision<fp32>} : vector<4x8xf32>, vector<8x256xf32>, vector<4x256xf32> -> vector<4x256xf32>
    %c0_34 = arith.constant 0 : index
    %c0_35 = arith.constant 0 : index
    %100 = vector.load %arg6[%c0_34, %c0_35] : memref<4x1xf32, #tpu.memory_space<vmem>>, vector<4x1xf32>
    %101 = vector.broadcast %100 : vector<4x1xf32> to vector<4x256xf32>
    %102 = arith.addf %99, %101 : vector<4x256xf32>
    %cst_36 = arith.constant 0.000000e+00 : f32
    %103 = vector.broadcast %cst_36 : f32 to vector<4x256xf32>
    %104 = arith.maximumf %102, %103 : vector<4x256xf32>
    %105 = vector.extract_strided_slice %104 {offsets = [0, 0], sizes = [2, 256], strides = [1, 1]} : vector<4x256xf32> to vector<2x256xf32>
    %c0_37 = arith.constant 0 : index
    %c17_38 = arith.constant 17 : index
    %106 = vector.load %arg10[%c0_37, %c17_38] : memref<8x290xf32, #tpu.memory_space<vmem>>, vector<2x256xf32>
    tpu.vector_store %arg10[%c0_37, %c17_38], %105 {strides = array<i32>} : memref<8x290xf32, #tpu.memory_space<vmem>>, vector<2x256xf32>,
    %107 = vector.extract_strided_slice %92 {offsets = [2, 0], sizes = [2, 256], strides = [1, 1]} : vector<8x256xf32> to vector<2x256xf32>
    %c2_39 = arith.constant 2 : index
    %c17_40 = arith.constant 17 : index
    %108 = vector.load %arg10[%c2_39, %c17_40] : memref<8x290xf32, #tpu.memory_space<vmem>>, vector<2x256xf32>
    tpu.vector_store %arg10[%c2_39, %c17_40], %107 {strides = array<i32>} : memref<8x290xf32, #tpu.memory_space<vmem>>, vector<2x256xf32>,
    %109 = vector.extract_strided_slice %104 {offsets = [2, 0], sizes = [2, 256], strides = [1, 1]} : vector<4x256xf32> to vector<2x256xf32>
    %c4 = arith.constant 4 : index
    %c17_41 = arith.constant 17 : index
    %110 = vector.load %arg10[%c4, %c17_41] : memref<8x290xf32, #tpu.memory_space<vmem>>, vector<2x256xf32>
    tpu.vector_store %arg10[%c4, %c17_41], %109 {strides = array<i32>} : memref<8x290xf32, #tpu.memory_space<vmem>>, vector<2x256xf32>,
    %111 = vector.extract_strided_slice %92 {offsets = [6, 0], sizes = [2, 256], strides = [1, 1]} : vector<8x256xf32> to vector<2x256xf32>
    %c6 = arith.constant 6 : index
    %c17_42 = arith.constant 17 : index
    %112 = vector.load %arg10[%c6, %c17_42] : memref<8x290xf32, #tpu.memory_space<vmem>>, vector<2x256xf32>
    tpu.vector_store %arg10[%c6, %c17_42], %111 {strides = array<i32>} : memref<8x290xf32, #tpu.memory_space<vmem>>, vector<2x256xf32>,
    %c0_43 = arith.constant 0 : index
    %c0_44 = arith.constant 0 : index
    %113 = vector.load %arg7[%c0_43, %c0_44] : memref<8x9xf32, #tpu.memory_space<vmem>>, vector<8x9xf32>
    %c0_45 = arith.constant 0 : index
    %c0_46 = arith.constant 0 : index
    %114 = vector.load %arg8[%c0_45, %c0_46] : memref<8x1xf32, #tpu.memory_space<vmem>>, vector<8x1xf32>
    %c0_47 = arith.constant 0 : index
    %c0_48 = arith.constant 0 : index
    %115 = vector.load %arg10[%c0_47, %c0_48] : memref<8x290xf32, #tpu.memory_space<vmem>>, vector<8x256xf32>
    %116 = vector.broadcast %20 : vector<1x256xf32> to vector<8x256xf32>
    %117 = arith.mulf %115, %116 : vector<8x256xf32>
    %118 = vector.extract_strided_slice %113 {offsets = [0, 0], sizes = [8, 1], strides = [1, 1]} : vector<8x9xf32> to vector<8x1xf32>
    %119 = vector.broadcast %118 : vector<8x1xf32> to vector<8x256xf32>
    %120 = arith.mulf %119, %117 : vector<8x256xf32>
    %c0_49 = arith.constant 0 : index
    %c1_50 = arith.constant 1 : index
    %121 = vector.load %arg10[%c0_49, %c1_50] : memref<8x290xf32, #tpu.memory_space<vmem>>, vector<8x256xf32>
    %122 = vector.extract_strided_slice %113 {offsets = [0, 1], sizes = [8, 1], strides = [1, 1]} : vector<8x9xf32> to vector<8x1xf32>
    %123 = vector.broadcast %122 : vector<8x1xf32> to vector<8x256xf32>
    %124 = arith.mulf %123, %121 : vector<8x256xf32>
    %125 = arith.addf %120, %124 : vector<8x256xf32>
    %c0_51 = arith.constant 0 : index
    %c2_52 = arith.constant 2 : index
    %126 = vector.load %arg10[%c0_51, %c2_52] : memref<8x290xf32, #tpu.memory_space<vmem>>, vector<8x256xf32>
    %127 = vector.broadcast %24 : vector<1x256xf32> to vector<8x256xf32>
    %128 = arith.mulf %126, %127 : vector<8x256xf32>
    %129 = vector.extract_strided_slice %113 {offsets = [0, 2], sizes = [8, 1], strides = [1, 1]} : vector<8x9xf32> to vector<8x1xf32>
    %130 = vector.broadcast %129 : vector<8x1xf32> to vector<8x256xf32>
    %131 = arith.mulf %130, %128 : vector<8x256xf32>
    %132 = arith.addf %125, %131 : vector<8x256xf32>
    %c0_53 = arith.constant 0 : index
    %c16_54 = arith.constant 16 : index
    %133 = vector.load %arg10[%c0_53, %c16_54] : memref<8x290xf32, #tpu.memory_space<vmem>>, vector<8x256xf32>
    %134 = vector.broadcast %20 : vector<1x256xf32> to vector<8x256xf32>
    %135 = arith.mulf %133, %134 : vector<8x256xf32>
    %136 = vector.extract_strided_slice %113 {offsets = [0, 3], sizes = [8, 1], strides = [1, 1]} : vector<8x9xf32> to vector<8x1xf32>
    %137 = vector.broadcast %136 : vector<8x1xf32> to vector<8x256xf32>
    %138 = arith.mulf %137, %135 : vector<8x256xf32>
    %139 = arith.addf %132, %138 : vector<8x256xf32>
    %c0_55 = arith.constant 0 : index
    %c17_56 = arith.constant 17 : index
    %140 = vector.load %arg10[%c0_55, %c17_56] : memref<8x290xf32, #tpu.memory_space<vmem>>, vector<8x256xf32>
    %141 = vector.extract_strided_slice %113 {offsets = [0, 4], sizes = [8, 1], strides = [1, 1]} : vector<8x9xf32> to vector<8x1xf32>
    %142 = vector.broadcast %141 : vector<8x1xf32> to vector<8x256xf32>
    %143 = arith.mulf %142, %140 : vector<8x256xf32>
    %144 = arith.addf %139, %143 : vector<8x256xf32>
    %c0_57 = arith.constant 0 : index
    %c18_58 = arith.constant 18 : index
    %145 = vector.load %arg10[%c0_57, %c18_58] : memref<8x290xf32, #tpu.memory_space<vmem>>, vector<8x256xf32>
    %146 = vector.broadcast %24 : vector<1x256xf32> to vector<8x256xf32>
    %147 = arith.mulf %145, %146 : vector<8x256xf32>
    %148 = vector.extract_strided_slice %113 {offsets = [0, 5], sizes = [8, 1], strides = [1, 1]} : vector<8x9xf32> to vector<8x1xf32>
    %149 = vector.broadcast %148 : vector<8x1xf32> to vector<8x256xf32>
    %150 = arith.mulf %149, %147 : vector<8x256xf32>
    %151 = arith.addf %144, %150 : vector<8x256xf32>
    %c0_59 = arith.constant 0 : index
    %c32_60 = arith.constant 32 : index
    %152 = vector.load %arg10[%c0_59, %c32_60] : memref<8x290xf32, #tpu.memory_space<vmem>>, vector<8x256xf32>
    %153 = vector.broadcast %20 : vector<1x256xf32> to vector<8x256xf32>
    %154 = arith.mulf %152, %153 : vector<8x256xf32>
    %155 = vector.extract_strided_slice %113 {offsets = [0, 6], sizes = [8, 1], strides = [1, 1]} : vector<8x9xf32> to vector<8x1xf32>
    %156 = vector.broadcast %155 : vector<8x1xf32> to vector<8x256xf32>
    %157 = arith.mulf %156, %154 : vector<8x256xf32>
    %158 = arith.addf %151, %157 : vector<8x256xf32>
    %c0_61 = arith.constant 0 : index
    %c33_62 = arith.constant 33 : index
    %159 = vector.load %arg10[%c0_61, %c33_62] : memref<8x290xf32, #tpu.memory_space<vmem>>, vector<8x256xf32>
    %160 = vector.extract_strided_slice %113 {offsets = [0, 7], sizes = [8, 1], strides = [1, 1]} : vector<8x9xf32> to vector<8x1xf32>
    %161 = vector.broadcast %160 : vector<8x1xf32> to vector<8x256xf32>
    %162 = arith.mulf %161, %159 : vector<8x256xf32>
    %163 = arith.addf %158, %162 : vector<8x256xf32>
    %c0_63 = arith.constant 0 : index
    %c34_64 = arith.constant 34 : index
    %164 = vector.load %arg10[%c0_63, %c34_64] : memref<8x290xf32, #tpu.memory_space<vmem>>, vector<8x256xf32>
    %165 = vector.broadcast %24 : vector<1x256xf32> to vector<8x256xf32>
    %166 = arith.mulf %164, %165 : vector<8x256xf32>
    %167 = vector.extract_strided_slice %113 {offsets = [0, 8], sizes = [8, 1], strides = [1, 1]} : vector<8x9xf32> to vector<8x1xf32>
    %168 = vector.broadcast %167 : vector<8x1xf32> to vector<8x256xf32>
    %169 = arith.mulf %168, %166 : vector<8x256xf32>
    %170 = arith.addf %163, %169 : vector<8x256xf32>
    %171 = vector.broadcast %114 : vector<8x1xf32> to vector<8x256xf32>
    %172 = arith.addf %170, %171 : vector<8x256xf32>
    %173 = arith.addf %172, %29 : vector<8x256xf32>
    %c0_65 = arith.constant 0 : index
    %c0_66 = arith.constant 0 : index
    %174 = vector.load %arg9[%c0_65, %c0_66] : memref<8x256xf32, #tpu.memory_space<vmem>>, vector<8x256xf32>
    tpu.vector_store %arg9[%c0_65, %c0_66], %173 {strides = array<i32>} : memref<8x256xf32, #tpu.memory_space<vmem>>, vector<8x256xf32>,
    return
  }
}

</mosaic_0001>

<bundles_post_ra>
// kernel: tpu_custom_call.1
= control target key start
LH: loop header
LB: loop body
LE: loop exit
PB: predicated region body
PF: predicated region fallthrough
CT: control target
= control target key end

     0   :  { %v33_v2 = vlaneseq  ;;  %v1724_v3 = vmov 1   ;;  %s1725_s13 = smov 17   ;;  %v1726_v5 = vmov 3   ;;  %vm72_vm0 = vcmask 138240   ;;  %s2141_s0 = inlined_call_operand.vmem [shape: f32[8,256], index: 0, kind: input, shape index: {}]   ;;  %s2142_s1 = inlined_call_operand.vmem [shape: f32[8,9], index: 1, kind: input, shape index: {}]   ;;  %s2143_s2 = inlined_call_operand.vmem [shape: f32[8,1], index: 2, kind: input, shape index: {}]   ;;  %s2144_s3 = inlined_call_operand.vmem [shape: f32[8,8], index: 3, kind: input, shape index: {}]   ;;  %s2145_s4 = inlined_call_operand.vmem [shape: f32[8,1], index: 4, kind: input, shape index: {}]   ;;  %s2146_s5 = inlined_call_operand.vmem [shape: f32[4,8], index: 5, kind: input, shape index: {}]   ;;  %s2147_s6 = inlined_call_operand.vmem [shape: f32[4,1], index: 6, kind: input, shape index: {}]   ;;  %s2148_s7 = inlined_call_operand.vmem [shape: f32[8,9], index: 7, kind: input, shape index: {}]   ;;  %s2149_s8 = inlined_call_operand.vmem [shape: f32[8,1], index: 8, kind: input, shape index: {}]   ;;  %s2150_s9 = inlined_call_operand.hbm [shape: f32[8,256], index: 9, kind: output, shape index: {}]  }
   0x1   :  { %v76_v0 = vld [vmem:[%s2141_s0] sm:$0xff]  ;;  %1653 = vset.pattern.permute.xlu1 %v1724_v3  ;;  %v77_v4 = vld [vmem:[%s2141_s0 + $0x8] sm:$0xff]  ;;  %1655 = vset.pattern.permute.xlu0 %v1726_v5  ;;  %vm74_vm1 = vcmask 277640   ;;  %v1727_v7 = vmov 0.0  }
   0x2   :  { %v1805_v1 = vld [vmem:[%s2142_s1] sm:$0xff]  ;;  %80 = vrot.lane.b32.xlu0 %v76_v0, %s1725_s13  ;;  %v34_v6 = vand.u32 127, %v33_v2  ;;  %442 = vmatprep.mubr.f32.mxu0 %v1727_v7  ;;  %73 = vst.msk [vmem:[#allocation2] sm:$0xff] %vm72_vm0, %v1727_v7 }
   0x3   :  { %109 = vperm.xlu1 %1653, %v1805_v1   ;;  %917 = vmatprep.mubr.f32.mxu1 %v1727_v7  ;;  %75 = vst.msk [vmem:[#allocation2 + $0x10] sm:$0xff] %vm74_vm1, %v1727_v7 }
   0x4   :  { %v35_v8 = vadd.s32 128, %v34_v6  ;;  %v40_v9 = vand.u32 15, %v34_v6 }
   0x5   :  { %14 = vsyncpa [#allocation4], 0  ;;  %v1728_v10 = vmov 2   ;;  %v1729_v18 = vmov 4   ;;  %s1730_s1 = smov 2   ;;  %s1731_s16 = smov 16  }
   0x6   :  { %82 = vrot.lane.b32.xlu0 %v77_v4, %s1725_s13  ;;  %v47_v11 = vand.u32 15, %v35_v8  ;;  %vm66_vm2 = vcmp.le.s32.totalorder %v40_v9, 14  ;;  %vm60_vm3 = vcmp.ge.s32.totalorder %v40_v9, 1  ;;  %v1732_v19 = vmov 6   ;;  %s1734_s17 = smov 32   ;;  %s1736_s18 = smov 18  }
   0x7   :  { %1654 = vset.pattern.permute.xlu1 %v1728_v10  ;;  %v1602_v12 = vsel %vm66_vm2, 1.0, %v1727_v7  ;;  %v1824_v13 = vsel %vm60_vm3, 1.0, %v1727_v7  ;;  %v1733_v20 = vmov 5   ;;  %v1735_v21 = vmov 0   ;;  %s1737_s19 = smov 34   ;;  %v93_v24 = vld [vmem:[%s2143_s2] sm:$0xff] }
   0x8   :  { %146 = vperm.xlu1 %1654, %v1805_v1   ;;  %vm67_vm4 = vcmp.le.s32.totalorder %v47_v11, 14  ;;  %vm61_vm5 = vcmp.ge.s32.totalorder %v47_v11, 1  ;;  %v1738_v22 = vmov 7   ;;  %v1739_v23 = vmov 8   ;;  %s1740_s2 = smov 127   ;;  %s1741_s22 = smov 126  }
   0x9   :  { %v1603_v14 = vsel %vm67_vm4, 1.0, %v1727_v7  ;;  %v1829_v15 = vsel %vm61_vm5, 1.0, %v1727_v7  ;;  %vm88_vm6 = vcmask 1047688   ;;  %vm137_vm7 = vcmask 15360   ;;  %s1742_s23 = smov 112   ;;  %s1743_s24 = smov 111  }
   0xa   :  { %183 = vperm.xlu0 %1655, %v1805_v1   ;;  %v1656_v16 = vpack.i.bf16 %v1603_v14, %v1602_v12  ;;  %v1662_v17 = vpack.i.bf16 %v1829_v15, %v1824_v13  ;;  %vm174_vm8 = vcmask 130048   ;;  %vm232_vm9 = vcmask 146432   ;;  %s1744_s25 = smov 110   ;;  %s1745_s26 = smov 96  }
   0xb   :  { %vm267_vm10 = vcmask 261120   ;;  %vm325_vm11 = vcmask 277504   ;;  %s1746_s27 = smov 95   ;;  %s1747_s28 = smov 94   ;;  %vm124_vm12 = vcmask 1039360   ;;  %vm161_vm13 = vcmask 1031168  }
   0xc   :  { %1661 = vset.pattern.permute.xlu1 %v1729_v18  ;;  %vm198_vm14 = vcmask 916480   ;;  %vm221_vm15 = vcmask 908288   ;;  %vm372_vm1 = vcmask 64512   ;;  %vm256_vm2 = vcmask 900096  }
   0xd   :  { %1657 = vrot.lane.b32.xlu1 %v1656_v16, %s1730_s1  ;;  %vm291_vm3 = vcmask 785408   ;;  %vm314_vm4 = vcmask 777216   ;;  %vm349_vm5 = vcmask 769024  }
   0xe   :  { %1663 = vrot.lane.b32.xlu0 %v1662_v17, %s1731_s16 }
   0xf   :  { %1668 = vset.pattern.permute.xlu0 %v1732_v19 }
  0x11   :  { %206 = vperm.xlu1 %1661, %v1805_v1  }
  0x12   :  { %276 = vperm.xlu0 %1668, %v1805_v1  }
  0x15   :  { %1667 = vset.pattern.permute.xlu1 %v1733_v20 }
  0x16   :  { %241 = vperm.xlu1 %1667, %v1805_v1   ;;  %1676 = vrot.lane.b32.xlu0 %v1662_v17, %s1734_s17 }
  0x17   :  { %1687 = vset.pattern.permute.xlu0 %v1735_v21 }
  0x1a   :  { %1670 = vrot.lane.b32.xlu1 %v1656_v16, %s1736_s18  ;;  %1682 = vrot.lane.b32.xlu0 %v1656_v16, %s1737_s19 }
  0x1b   :  { %1674 = vset.pattern.permute.xlu1 %v1738_v22 }
  0x1e   :  { %299 = vperm.xlu1 %1674, %v1805_v1  }
  0x22   :  { %1680 = vset.pattern.permute.xlu1 %v1739_v23 }
  0x23   :  { %334 = vperm.xlu1 %1680, %v1805_v1  }
  0x27   :  { %1686 = vset.pattern.permute.xlu1 %v1735_v21 }
  0x28   :  { %100 = vperm.xlu1 %1686, %v1805_v1  }
  0x2c   :  { %358 = vperm.xlu1 %1686, %v93_v24  }
  0x74   :  { %v81_v25 = vpop.permute.xlu0 %80 }
  0x75   :  { %89 = vst.msk [vmem:[#allocation2] sm:$0xff] %vm88_vm6, %v81_v25  ;;  %vm1346_vm6 = vcmask 134146  }
  0x78   :  { %v83_v26 = vpop.permute.xlu0 %82 }
  0x79   :  { %v1850_v27 = vsel %vm72_vm0, %v81_v25, %v83_v26  ;;  %91 = vst.msk [vmem:[#allocation2 + $0x10] sm:$0xff] %vm72_vm0, %v83_v26 }
  0x7a   :  { %90 = vst [vmem:[#allocation2 + $0x8] sm:$0xff] %v1850_v27 }
  0x7c   :  { %v1860_v32 = vld [vmem:[#allocation2] sm:$0xff] }
  0x80   :  { %v1854_v28 = vld [vmem:[#allocation2 + $0x10] sm:$0xff] }
  0x82   :  { %v110_v29 = vpop.permute.xlu1 %109 }
  0x83   :  { %v113_v30 = vmul.f32 %v110_v29, %v1850_v27  ;;  %v114_v31 = vmul.f32 %v110_v29, %v1854_v28  ;;  %v112_v33 = vmul.f32 %v110_v29, %v1860_v32 }
  0x85   :  { %122 = vrot.lane.b32.xlu1 %v114_v31, %s1740_s2  ;;  %120 = vrot.lane.b32.xlu0 %v113_v30, %s1740_s2 }
  0x87   :  { %v147_v34 = vpop.permute.xlu1 %146 }
  0x89   :  { %v184_v35 = vpop.permute.xlu0 %183  ;;  %118 = vrot.lane.b32.xlu0 %v112_v33, %s1740_s2 }
  0x8b   :  { %v1658_v36 = vpop.permute.xlu1 %1657 }
  0x8c   :  { %v1864_v37 = vunpack.i.h.bf16 %v1658_v36  ;;  %v1866_v38 = vunpack.i.l.bf16 %v1658_v36 }
  0x8d   :  { %v1664_v39 = vpop.permute.xlu0 %1663 }
  0x8e   :  { %v1870_v40 = vsel %vm137_vm7, %v1866_v38, %v1864_v37  ;;  %v1872_v41 = vunpack.i.h.bf16 %v1664_v39  ;;  %v1874_v42 = vunpack.i.l.bf16 %v1664_v39  ;;  %v144_v43 = vmul.f32 %v1864_v37, %v1854_v28 }
  0x8f   :  { %v143_v44 = vmul.f32 %v1870_v40, %v1850_v27  ;;  %v142_v49 = vmul.f32 %v1866_v38, %v1860_v32  ;;  %vm1366_vm7 = vcmask 138246  }
  0x90   :  { %v1882_v45 = vsel %vm174_vm8, %v1874_v42, %v1872_v41  ;;  %v207_v46 = vpop.permute.xlu1 %206  ;;  %v151_v47 = vmul.f32 %v147_v34, %v144_v43  ;;  %v179_v52 = vmul.f32 %v1874_v42, %v1860_v32  ;;  %v181_v56 = vmul.f32 %v1872_v41, %v1854_v28 }
  0x91   :  { %v150_v48 = vmul.f32 %v147_v34, %v143_v44  ;;  %v180_v50 = vmul.f32 %v1882_v45, %v1850_v27  ;;  %v277_v53 = vpop.permute.xlu0 %276  ;;  %v149_v55 = vmul.f32 %v147_v34, %v142_v49  ;;  %v211_v63 = vmul.f32 %v207_v46, %v1854_v28 }
  0x92   :  { %159 = vrot.lane.b32.xlu0 %v151_v47, %s1741_s22  ;;  %v186_v57 = vmul.f32 %v184_v35, %v179_v52  ;;  %v188_v59 = vmul.f32 %v184_v35, %v181_v56  ;;  %v210_v1 = vmul.f32 %v207_v46, %v1850_v27  ;;  %v209_v11 = vmul.f32 %v207_v46, %v1860_v32 }
  0x93   :  { %157 = vrot.lane.b32.xlu1 %v150_v48, %s1741_s22  ;;  %v187_v51 = vmul.f32 %v184_v35, %v180_v50  ;;  %vm1343_vm8 = vcmask 1043594  }
  0x95   :  { %v242_v54 = vpop.permute.xlu1 %241  ;;  %v1677_v62 = vpop.permute.xlu0 %1676 }
  0x96   :  { %194 = vrot.lane.b32.xlu0 %v187_v51, %s1742_s23  ;;  %v1910_v4 = vunpack.i.h.bf16 %v1677_v62  ;;  %v1912_v6 = vunpack.i.l.bf16 %v1677_v62 }
  0x97   :  { %155 = vrot.lane.b32.xlu1 %v149_v55, %s1741_s22 }
  0x98   :  { %v1923_v14 = vsel %vm267_vm10, %v1912_v6, %v1910_v4  ;;  %v274_v17 = vmul.f32 %v1910_v4, %v1854_v28  ;;  %v272_v30 = vmul.f32 %v1912_v6, %v1860_v32  ;;  %vm1328_vm10 = vcmask 1041544  }
  0x99   :  { %v1671_v58 = vpop.permute.xlu1 %1670  ;;  %v273_v25 = vmul.f32 %v1923_v14, %v1850_v27  ;;  %v1683_v26 = vpop.permute.xlu0 %1682 }
  0x9a   :  { %v1896_v60 = vunpack.i.h.bf16 %v1671_v58  ;;  %v1898_v61 = vunpack.i.l.bf16 %v1671_v58  ;;  %192 = vrot.lane.b32.xlu0 %v186_v57, %s1742_s23  ;;  %v281_v29 = vmul.f32 %v277_v53, %v274_v17  ;;  %v1936_v34 = vunpack.i.h.bf16 %v1683_v26 }
  0x9b   :  { %196 = vrot.lane.b32.xlu1 %v188_v59, %s1742_s23  ;;  %v280_v31 = vmul.f32 %v277_v53, %v273_v25  ;;  %v1938_v35 = vunpack.i.l.bf16 %v1683_v26  ;;  %v279_v36 = vmul.f32 %v277_v53, %v272_v30 }
  0x9c   :  { %v1905_v0 = vsel %vm232_vm9, %v1898_v61, %v1896_v60  ;;  %v237_v9 = vmul.f32 %v1898_v61, %v1860_v32  ;;  %v239_v12 = vmul.f32 %v1896_v60, %v1854_v28  ;;  %v332_v49 = vmul.f32 %v1936_v34, %v1854_v28 }
  0x9d   :  { %v238_v2 = vmul.f32 %v1905_v0, %v1850_v27  ;;  %v300_v33 = vpop.permute.xlu1 %299  ;;  %v1945_v43 = vsel %vm325_vm11, %v1938_v35, %v1936_v34  ;;  %v330_v52 = vmul.f32 %v1938_v35, %v1860_v32  ;;  %vm1363_vm9 = vcmask 1047694  }
  0x9e   :  { %219 = vrot.lane.b32.xlu0 %v211_v63, %s1743_s24  ;;  %v244_v16 = vmul.f32 %v242_v54, %v237_v9  ;;  %v246_v24 = vmul.f32 %v242_v54, %v239_v12  ;;  %v303_v39 = vmul.f32 %v300_v33, %v1850_v27  ;;  %v304_v44 = vmul.f32 %v300_v33, %v1854_v28  ;;  %v842_v28 = vld [vmem:[%s2147_s6] sm:$0xf] }
  0x9f   :  { %217 = vrot.lane.b32.xlu1 %v210_v1, %s1743_s24  ;;  %v245_v8 = vmul.f32 %v242_v54, %v238_v2  ;;  %v302_v46 = vmul.f32 %v300_v33, %v1860_v32  ;;  %v331_v48 = vmul.f32 %v1945_v43, %v1850_v27  ;;  %v366_v54 = vld [vmem:[%s2145_s4] sm:$0xff]  ;;  %vm1358_vm11 = vcmask 1045644  }
  0xa2   :  { %252 = vrot.lane.b32.xlu0 %v245_v8, %s1744_s25  ;;  %v335_v47 = vpop.permute.xlu1 %334 }
  0xa3   :  { %215 = vrot.lane.b32.xlu1 %v209_v11, %s1743_s24  ;;  %v338_v50 = vmul.f32 %v335_v47, %v331_v48  ;;  %v339_v51 = vmul.f32 %v335_v47, %v332_v49  ;;  %v337_v53 = vmul.f32 %v335_v47, %v330_v52 }
  0xa6   :  { %250 = vrot.lane.b32.xlu0 %v244_v16, %s1744_s25 }
  0xa7   :  { %254 = vrot.lane.b32.xlu1 %v246_v24, %s1744_s25  ;;  %v101_v55 = vpop.permute.xlu1 %100  ;;  %v97_v24 = vmul.f32 %v1829_v15, %v1850_v27  ;;  %v365_v27 = vld [vmem:[%s2144_s3] sm:$0xff] }
  0xaa   :  { %289 = vrot.lane.b32.xlu0 %v281_v29, %s1745_s26 }
  0xab   :  { %287 = vrot.lane.b32.xlu1 %v280_v31, %s1745_s26  ;;  %v1969_v57 = vpop.permute.xlu1 %358  ;;  %v104_v31 = vmul.f32 %v101_v55, %v97_v24 }
  0xae   :  { %285 = vrot.lane.b32.xlu0 %v279_v36, %s1745_s26 }
  0xaf   :  { %310 = vrot.lane.b32.xlu1 %v303_v39, %s1746_s27 }
  0xb2   :  { %312 = vrot.lane.b32.xlu0 %v304_v44, %s1746_s27 }
  0xb3   :  { %308 = vrot.lane.b32.xlu1 %v302_v46, %s1746_s27 }
  0xb6   :  { %345 = vrot.lane.b32.xlu0 %v338_v50, %s1747_s28 }
  0xb7   :  { %347 = vrot.lane.b32.xlu1 %v339_v51, %s1747_s28 }
  0xba   :  { %343 = vrot.lane.b32.xlu0 %v337_v53, %s1747_s28  ;;  %v374_v53 = vsel %vm372_vm1, %v365_v27, 0 }
  0xbb   :  { %369 = vperm.xlu1 %1686, %v366_v54  }
  0xbe   :  { %845 = vperm.xlu0 %1687, %v842_v28  }
  0xbf   :  { %1689 = vset.pattern.permute.xlu1 %v1728_v10 }
  0xc2   :  { %1688 = vset.pattern.permute.xlu0 %v1724_v3  ;;  %v96_v3 = vmul.f32 %v1824_v13, %v1860_v32 }
  0xc4   :  { %v103_v29 = vmul.f32 %v101_v55, %v96_v3 }
  0xf7   :  { %v121_v56 = vpop.permute.xlu0 %120  ;;  %v123_v59 = vpop.permute.xlu1 %122 }
  0xf8   :  { %v126_v30 = vsel %vm124_vm12, %v121_v56, %v123_v59 }
  0xf9   :  { %v130_v32 = vadd.f32 %v126_v30, %v104_v31 }
  0xfb   :  { %v119_v58 = vpop.permute.xlu0 %118 }
  0xfc   :  { %v125_v25 = vsel %vm124_vm12, %v119_v58, %v121_v56 }
  0xfd   :  { %v129_v36 = vadd.f32 %v125_v25, %v103_v29 }
 0x104   :  { %v160_v62 = vpop.permute.xlu0 %159 }
 0x105   :  { %v158_v63 = vpop.permute.xlu1 %157 }
 0x106   :  { %v163_v39 = vsel %vm161_vm13, %v158_v63, %v160_v62  ;;  %v1988_v62 = vand.u32 4294901760, %v374_v53 }
 0x107   :  { %v167_v49 = vadd.f32 %v163_v39, %v130_v32 }
 0x108   :  { %v195_v1 = vpop.permute.xlu0 %194  ;;  %v444_v24 = vsub.f32 %v374_v53, %v1988_v62 }
 0x109   :  { %v156_v2 = vpop.permute.xlu1 %155 }
 0x10a   :  { %v162_v33 = vsel %vm161_vm13, %v156_v2, %v158_v63 }
 0x10b   :  { %v166_v47 = vadd.f32 %v162_v33, %v129_v36 }
 0x10c   :  { %v193_v8 = vpop.permute.xlu0 %192 }
 0x10d   :  { %v197_v9 = vpop.permute.xlu1 %196  ;;  %v199_v50 = vsel %vm198_vm14, %v193_v8, %v195_v1 }
 0x10e   :  { %v200_v48 = vsel %vm198_vm14, %v195_v1, %v197_v9  ;;  %v203_v56 = vadd.f32 %v199_v50, %v166_v47 }
 0x10f   :  { %v204_v54 = vadd.f32 %v200_v48, %v167_v49 }
 0x110   :  { %v220_v11 = vpop.permute.xlu0 %219 }
 0x111   :  { %v218_v12 = vpop.permute.xlu1 %217 }
 0x112   :  { %v223_v51 = vsel %vm221_vm15, %v218_v12, %v220_v11 }
 0x113   :  { %v227_v59 = vadd.f32 %v223_v51, %v204_v54 }
 0x114   :  { %v253_v16 = vpop.permute.xlu0 %252 }
 0x115   :  { %v216_v17 = vpop.permute.xlu1 %215 }
 0x116   :  { %v222_v28 = vsel %vm221_vm15, %v216_v17, %v218_v12 }
 0x117   :  { %v226_v63 = vadd.f32 %v222_v28, %v203_v56 }
 0x118   :  { %v251_v10 = vpop.permute.xlu0 %250 }
 0x119   :  { %v255_v26 = vpop.permute.xlu1 %254  ;;  %v257_v8 = vsel %vm256_vm2, %v251_v10, %v253_v16  ;;  %v445_v10 = vand.u32 4294901760, %v444_v24 }
 0x11a   :  { %v258_v58 = vsel %vm256_vm2, %v253_v16, %v255_v26  ;;  %v261_v25 = vadd.f32 %v257_v8, %v226_v63 }
 0x11b   :  { %v262_v9 = vadd.f32 %v258_v58, %v227_v59  ;;  %v446_v48 = vsub.f32 %v444_v24, %v445_v10 }
 0x11c   :  { %v290_v44 = vpop.permute.xlu0 %289 }
 0x11d   :  { %v288_v46 = vpop.permute.xlu1 %287 }
 0x11e   :  { %v293_v1 = vsel %vm291_vm3, %v288_v46, %v290_v44 }
 0x11f   :  { %v297_v12 = vadd.f32 %v293_v1, %v262_v9 }
 0x120   :  { %v286_v52 = vpop.permute.xlu0 %285 }
 0x121   :  { %v311_v55 = vpop.permute.xlu1 %310  ;;  %v292_v17 = vsel %vm291_vm3, %v286_v52, %v288_v46  ;;  %v447_v52 = vand.u32 4294901760, %v446_v48 }
 0x122   :  { %v296_v33 = vadd.f32 %v292_v17, %v261_v25 }
 0x124   :  { %v313_v2 = vpop.permute.xlu0 %312 }
 0x125   :  { %v309_v11 = vpop.permute.xlu1 %308  ;;  %v316_v3 = vsel %vm314_vm4, %v311_v55, %v313_v2 }
 0x126   :  { %v320_v29 = vadd.f32 %v316_v3, %v297_v12  ;;  %v315_v30 = vsel %vm314_vm4, %v309_v11, %v311_v55  ;;  %v841_v3 = vld [vmem:[%s2146_s5] sm:$0xf] }
 0x127   :  { %v319_v39 = vadd.f32 %v315_v30, %v296_v33 }
 0x128   :  { %v346_v26 = vpop.permute.xlu0 %345 }
 0x129   :  { %v348_v31 = vpop.permute.xlu1 %347 }
 0x12a   :  { %v351_v36 = vsel %vm349_vm5, %v346_v26, %v348_v31 }
 0x12b   :  { %v355_v16 = vadd.f32 %v351_v36, %v320_v29 }
 0x12c   :  { %v344_v44 = vpop.permute.xlu0 %343 }
 0x12d   :  { %v350_v32 = vsel %vm349_vm5, %v344_v44, %v346_v26  ;;  %v362_v46 = vadd.f32 %v1969_v57, %v355_v16 }
 0x12e   :  { %v354_v27 = vadd.f32 %v350_v32, %v319_v39 }
 0x12f   :  { %v364_v47 = vmax.f32 %v362_v46, 0.0 }
 0x130   :  { %v361_v49 = vadd.f32 %v1969_v57, %v354_v27 }
 0x131   :  { %1337 = vrot.lane.b32.xlu1 %v364_v47, %s1725_s13  ;;  %v376_v50 = vand.u32 4294901760, %v364_v47 }
 0x132   :  { %v363_v51 = vmax.f32 %v361_v49, 0.0 }
 0x133   :  { %377 = vmatprep.subr.mxu0 %v376_v50  ;;  %v455_v53 = vsub.f32 %v364_v47, %v376_v50 }
 0x134   :  { %1335 = vrot.lane.b32.xlu0 %v363_v51, %s1725_s13  ;;  %v378_v54 = vand.u32 4294901760, %v363_v51 }
 0x135   :  { %v456_v28 = vand.u32 4294901760, %v455_v53 }
 0x136   :  { %379 = vmatpush1.msra.mxu0 %v378_v54  ;;  %v461_v55 = vsub.f32 %v363_v51, %v378_v54 }
 0x137   :  { %448 = vmatmul.mubr.f32.vlgmr.msra.gmra.mrb[0].mxu0 %v447_v52  ;;  %v457_v56 = vsub.f32 %v455_v53, %v456_v28 }
 0x138   :  { %v462_v58 = vand.u32 4294901760, %v461_v55  ;;  %528 = vmatprep.mubr.f32.mxu0 %v1727_v7 }
 0x139   :  { %v458_v59 = vand.u32 4294901760, %v457_v56  ;;  %v1369_v56 = vld [vmem:[%s2149_s8] sm:$0xff] }
 0x13a   :  { %v463_v57 = vsub.f32 %v461_v55, %v462_v58  ;;  %v370_v1 = vpop.permute.xlu1 %369 }
 0x13b   :  { %459 = vmatprep.subr.mxu0 %v458_v59 }
 0x13c   :  { %v464_v63 = vand.u32 4294901760, %v463_v57 }
 0x13d   :  { %v846_v2 = vpop.permute.xlu0 %845 }
 0x13e   :  { %465 = vmatpush1.msra.mxu0 %v464_v63 }
 0x13f   :  { %530 = vmatmul.mubr.f32.vlgmr.msra.gmra.mrb[0].mxu0 %v1988_v62  ;;  %538 = vmatprep.subr.mxu0 %v455_v53 }
 0x140   :  { %541 = vmatpush1.msra.mxu0 %v461_v55  ;;  %604 = vmatprep.mubr.f32.mxu0 %v1727_v7  ;;  %v1368_v55 = vld [vmem:[%s2148_s7] sm:$0xff]  ;;  %s1748_s7 = smov [#allocation3]  }
 0x141   :  { %614 = vmatprep.subr.mxu0 %v376_v50  ;;  %s1592_s8 = sshll.u32 %s1748_s7, 4  ;;  %s1593_s8 = int_to_ptr.vmem [resolvable:$true] %s1592_s8 }
 0x142   :  { %s1700_s19 = scalar_lea.vmem %s1593_s8, 256  ;;  %p1705_p1 = scmp.lt.s32.totalorder %s1593_s8, %s1593_s8 }
 0x143   :  { %p1701_p0 = scmp.ne.s32.totalorder %s1593_s8, %s1700_s19  ;;  %p1706_p2 = scmp.lt.s32.totalorder %s1700_s19, %s1700_s19 }
 0x145   :  { %p1707_p3 = por %p1706_p2, %p1705_p1 }
 0x147   :  { %607 = vmatmul.mubr.f32.vlgmr.msra.gmra.mrb[0].mxu0 %v444_v24  ;;  %p1708_p4 = pnand %p1707_p3, %p1701_p0 }
 0x148   :  { %616 = vmatpush1.msra.mxu0 %v378_v54  ;;  %679 = vmatprep.mubr.f32.mxu0 %v1727_v7 }
 0x149   :  { %692 = vmatprep.subr.mxu0 %v456_v28 }
 0x14f   :  { %683 = vmatmul.mubr.f32.vlgmr.msra.gmra.mrb[0].mxu0 %v445_v10 }
 0x150   :  { %696 = vmatpush1.msra.mxu0 %v462_v58  ;;  %759 = vmatprep.mubr.f32.mxu0 %v1727_v7 }
 0x151   :  { %768 = vmatprep.subr.mxu0 %v376_v50 }
 0x157   :  { %761 = vmatmul.mubr.f32.vlgmr.msra.gmra.mrb[0].mxu0 %v1988_v62 }
 0x158   :  { %770 = vmatpush1.msra.mxu0 %v378_v54  ;;  %833 = vmatprep.mubr.f32.mxu0 %v1727_v7 }
 0x15f   :  { %835 = vmatmul.mubr.f32.vlgmr.msra.gmra.mrb[0].mxu0 %v1988_v62  ;;  %v849_v62 = vsel %vm372_vm1, %v841_v3, 0  ;;  %vm1331_vm1 = vcmask 132096  }
 0x160   :  { %v918_v12 = vand.u32 4294901760, %v849_v62 }
 0x162   :  { %v919_v17 = vsub.f32 %v849_v62, %v918_v12 }
 0x164   :  { %v920_v24 = vand.u32 4294901760, %v919_v17 }
 0x166   :  { %v921_v26 = vsub.f32 %v919_v17, %v920_v24 }
 0x168   :  { %v922_v16 = vand.u32 4294901760, %v921_v26 }
 0x1a3   :  { %v1338_v8 = vpop.permute.xlu1 %1337 }
 0x1a4   :  { %1347 = vst.msk [vmem:[#allocation2 + $0x10] sm:$0xc] %vm1346_vm6, %v1338_v8  ;;  %vm1361_vm6 = vcmask 136196  }
 0x1a5   :  { %1367 = vst.msk [vmem:[#allocation2 + $0x10] sm:$0xc0] %vm1366_vm7, %v1338_v8 }
 0x1a6   :  { %v1336_v9 = vpop.permute.xlu0 %1335 }
 0x1a7   :  { %v1339_v11 = vsel %vm72_vm0, %v1336_v9, %v1338_v8  ;;  %1344 = vst.msk [vmem:[#allocation2] sm:$0xc] %vm1343_vm8, %v1336_v9 }
 0x1a8   :  { %1364 = vst.msk [vmem:[#allocation2] sm:$0xc0] %vm1363_vm9, %v1336_v9  ;;  %1345 = vst [vmem:[#allocation2 + $0x8] sm:$0xcc] %v1339_v11  }
 0x232   :  { %v836_v25 = vpop.f32.mrb[0].mxu0 }
 0x233   :  { %v1604_v29 = vadd.f32 %v836_v25, %v370_v1  ;;  %v838_v30 = vpop.f32.mrb[1].mxu0 }
 0x234   :  { %v1605_v31 = vadd.f32 %v838_v30, %v370_v1 }
 0x235   :  { %v853_v33 = vand.u32 4294901760, %v1604_v29 }
 0x236   :  { %v851_v36 = vand.u32 4294901760, %v1605_v31 }
 0x237   :  { %v936_v10 = vsub.f32 %v1604_v29, %v853_v33 }
 0x238   :  { %v930_v39 = vsub.f32 %v1605_v31, %v851_v36  ;;  %852 = vmatprep.subr.mxu1 %v851_v36 }
 0x239   :  { %v937_v44 = vand.u32 4294901760, %v936_v10  ;;  %854 = vmatpush1.msra.mxu1 %v853_v33 }
 0x23a   :  { %923 = vmatmul.mubr.f32.vlgmr.msra.gmra.mrb[0].mxu1 %v922_v16  ;;  %v931_v32 = vand.u32 4294901760, %v930_v39 }
 0x23b   :  { %v938_v46 = vsub.f32 %v936_v10, %v937_v44  ;;  %1003 = vmatprep.mubr.f32.mxu1 %v1727_v7 }
 0x23c   :  { %v932_v27 = vsub.f32 %v930_v39, %v931_v32 }
 0x23d   :  { %v939_v48 = vand.u32 4294901760, %v938_v46 }
 0x23e   :  { %v933_v47 = vand.u32 4294901760, %v932_v27 }
 0x240   :  { %934 = vmatprep.subr.mxu1 %v933_v47 }
 0x241   :  { %940 = vmatpush1.msra.mxu1 %v939_v48 }
 0x242   :  { %1005 = vmatmul.mubr.f32.vlgmr.msra.gmra.mrb[0].mxu1 %v918_v12  ;;  %1013 = vmatprep.subr.mxu1 %v930_v39 }
 0x243   :  { %1016 = vmatpush1.msra.mxu1 %v936_v10  ;;  %1079 = vmatprep.mubr.f32.mxu1 %v1727_v7 }
 0x244   :  { %1089 = vmatprep.subr.mxu1 %v851_v36 }
 0x24a   :  { %1082 = vmatmul.mubr.f32.vlgmr.msra.gmra.mrb[0].mxu1 %v919_v17 }
 0x24b   :  { %1091 = vmatpush1.msra.mxu1 %v853_v33  ;;  %1154 = vmatprep.mubr.f32.mxu1 %v1727_v7 }
 0x24c   :  { %1167 = vmatprep.subr.mxu1 %v931_v32 }
 0x252   :  { %1158 = vmatmul.mubr.f32.vlgmr.msra.gmra.mrb[0].mxu1 %v920_v24 }
 0x253   :  { %1171 = vmatpush1.msra.mxu1 %v937_v44  ;;  %1234 = vmatprep.mubr.f32.mxu1 %v1727_v7 }
 0x254   :  { %1243 = vmatprep.subr.mxu1 %v851_v36 }
 0x25a   :  { %1236 = vmatmul.mubr.f32.vlgmr.msra.gmra.mrb[0].mxu1 %v918_v12 }
 0x25b   :  { %1245 = vmatpush1.msra.mxu1 %v853_v33  ;;  %1308 = vmatprep.mubr.f32.mxu1 %v1727_v7 }
 0x262   :  { %1310 = vmatmul.mubr.f32.vlgmr.msra.gmra.mrb[0].mxu1 %v918_v12 }
 0x335   :  { %v1311_v49 = vpop.f32.mrb[0].mxu1 }
 0x336   :  { %v1606_v50 = vadd.f32 %v1311_v49, %v846_v2  ;;  %v1313_v51 = vpop.f32.mrb[1].mxu1 }
 0x337   :  { %v1607_v53 = vadd.f32 %v1313_v51, %v846_v2 }
 0x338   :  { %v1316_v52 = vmax.f32 %v1606_v50, 0.0 }
 0x339   :  { %v1317_v28 = vmax.f32 %v1607_v53, 0.0 }
 0x33a   :  { %v1348_v54 = vrot.slane %v1316_v52, 6  ;;  %1320 = vrot.lane.b32.xlu1 %v1316_v52, %s1725_s13 }
 0x33b   :  { %v1349_v7 = vrot.slane %v1317_v28, 6 }
 0x33c   :  { %1350 = vrot.lane.b32.xlu0 %v1348_v54, %s1725_s13 }
 0x33e   :  { %1322 = vrot.lane.b32.xlu1 %v1317_v28, %s1725_s13 }
 0x340   :  { %1385 = vperm.xlu0 %1688, %v1368_v55  }
 0x342   :  { %1410 = vperm.xlu1 %1689, %v1368_v55  }
 0x344   :  { %1691 = vset.pattern.permute.xlu0 %v1729_v18 }
 0x345   :  { %1457 = vperm.xlu0 %1691, %v1368_v55  }
 0x346   :  { %1352 = vrot.lane.b32.xlu1 %v1349_v7, %s1725_s13 }
 0x347   :  { %1690 = vset.pattern.permute.xlu1 %v1726_v5 }
 0x349   :  { %1694 = vset.pattern.permute.xlu0 %v1738_v22 }
 0x34a   :  { %1435 = vperm.xlu1 %1690, %v1368_v55   ;;  %1529 = vperm.xlu0 %1694, %v1368_v55  }
 0x34e   :  { %1692 = vset.pattern.permute.xlu1 %v1733_v20  ;;  %1697 = vset.pattern.permute.xlu0 %v1735_v21 }
 0x34f   :  { %1482 = vperm.xlu1 %1692, %v1368_v55   ;;  %1577 = vperm.xlu0 %1697, %v1369_v56  }
 0x353   :  { %1693 = vset.pattern.permute.xlu1 %v1732_v19 }
 0x354   :  { %1507 = vperm.xlu1 %1693, %v1368_v55  }
 0x358   :  { %1695 = vset.pattern.permute.xlu1 %v1739_v23 }
 0x359   :  { %1554 = vperm.xlu1 %1695, %v1368_v55  }
 0x35d   :  { %1696 = vset.pattern.permute.xlu1 %v1735_v21 }
 0x35e   :  { %1376 = vperm.xlu1 %1696, %v1368_v55  }
 0x3ac   :  { %v1321_v5 = vpop.permute.xlu1 %1320 }
 0x3ad   :  { %1329 = vst.msk [vmem:[#allocation2] sm:$0x3] %vm1328_vm10, %v1321_v5 }
 0x3ae   :  { %v1351_v18 = vpop.permute.xlu0 %1350 }
 0x3af   :  { %1359 = vst.msk [vmem:[#allocation2] sm:$0x30] %vm1358_vm11, %v1351_v18 }
 0x3b0   :  { %v1323_v20 = vpop.permute.xlu1 %1322 }
 0x3b1   :  { %v1324_v22 = vsel %vm72_vm0, %v1321_v5, %v1323_v20  ;;  %1332 = vst.msk [vmem:[#allocation2 + $0x10] sm:$0x3] %vm1331_vm1, %v1323_v20 }
 0x3b2   :  { %1330 = vst [vmem:[#allocation2 + $0x8] sm:$0x3] %v1324_v22 }
 0x3b6   :  { %v2039_v19 = vld [vmem:[#allocation2] sm:$0xff] }
 0x3b7   :  { %v1431_v62 = vmul.f32 %v1874_v42, %v2039_v19  ;;  %v1406_v29 = vmul.f32 %v1866_v38, %v2039_v19  ;;  %v1478_v31 = vmul.f32 %v1898_v61, %v2039_v19  ;;  %v1503_v10 = vmul.f32 %v1912_v6, %v2039_v19 }
 0x3b8   :  { %v1550_v53 = vmul.f32 %v1938_v35, %v2039_v19 }
 0x3bf   :  { %v1386_v58 = vpop.permute.xlu0 %1385 }
 0x3c0   :  { %v1388_v23 = vmul.f32 %v1386_v58, %v2039_v19 }
 0x3c1   :  { %v1411_v59 = vpop.permute.xlu1 %1410 }
 0x3c2   :  { %1394 = vrot.lane.b32.xlu0 %v1388_v23, %s1740_s2  ;;  %v1413_v30 = vmul.f32 %v1411_v59, %v1406_v29 }
 0x3c4   :  { %v1458_v21 = vpop.permute.xlu0 %1457 }
 0x3c5   :  { %v1460_v57 = vmul.f32 %v1458_v21, %v2039_v19  ;;  %v1353_v63 = vpop.permute.xlu1 %1352 }
 0x3c6   :  { %v1354_v1 = vsel %vm72_vm0, %v1351_v18, %v1353_v63  ;;  %1362 = vst.msk [vmem:[#allocation2 + $0x10] sm:$0x30] %vm1361_vm6, %v1353_v63 }
 0x3c7   :  { %1360 = vst [vmem:[#allocation2 + $0x8] sm:$0x30] %v1354_v1  ;;  %1466 = vrot.lane.b32.xlu1 %v1460_v57, %s1743_s24 }
 0x3c9   :  { %v1530_v2 = vpop.permute.xlu0 %1529  ;;  %v1436_v11 = vpop.permute.xlu1 %1435 }
 0x3ca   :  { %v1532_v8 = vmul.f32 %v1530_v2, %v2039_v19  ;;  %v1438_v24 = vmul.f32 %v1436_v11, %v1431_v62 }
 0x3cc   :  { %1538 = vrot.lane.b32.xlu1 %v1532_v8, %s1746_s27 }
 0x3cd   :  { %v1383_v9 = vld [vmem:[#allocation2 + $0x10] sm:$0xff] }
 0x3ce   :  { %v1390_v3 = vmul.f32 %v1386_v58, %v1383_v9  ;;  %v1462_v12 = vmul.f32 %v1458_v21, %v1383_v9  ;;  %v2051_v17 = vld [vmem:[#allocation2 + $0x8] sm:$0xff]  ;;  %v1483_v25 = vpop.permute.xlu1 %1482  ;;  %v1433_v36 = vmul.f32 %v1872_v41, %v1383_v9  ;;  %v1480_v44 = vmul.f32 %v1896_v60, %v1383_v9 }
 0x3cf   :  { %v1389_v26 = vmul.f32 %v1386_v58, %v2051_v17  ;;  %v1461_v42 = vmul.f32 %v1458_v21, %v2051_v17  ;;  %v1485_v16 = vmul.f32 %v1483_v25, %v1478_v31  ;;  %v1533_v61 = vmul.f32 %v1530_v2, %v2051_v17 }
 0x3d0   :  { %1398 = vrot.lane.b32.xlu0 %v1390_v3, %s1740_s2  ;;  %1470 = vrot.lane.b32.xlu1 %v1462_v12, %s1743_s24  ;;  %v1440_v39 = vmul.f32 %v1436_v11, %v1433_v36  ;;  %v1408_v41 = vmul.f32 %v1864_v37, %v1383_v9  ;;  %v1487_v32 = vmul.f32 %v1483_v25, %v1480_v44 }
 0x3d1   :  { %v1407_v6 = vmul.f32 %v2051_v17, %v1870_v40  ;;  %v1505_v27 = vmul.f32 %v1910_v4, %v1383_v9  ;;  %v1432_v47 = vmul.f32 %v2051_v17, %v1882_v45  ;;  %v1534_v37 = vmul.f32 %v1530_v2, %v1383_v9 }
 0x3d2   :  { %v1415_v46 = vmul.f32 %v1411_v59, %v1408_v41  ;;  %v1479_v40 = vmul.f32 %v2051_v17, %v1905_v0  ;;  %v1504_v50 = vmul.f32 %v2051_v17, %v1923_v14  ;;  %v1551_v52 = vmul.f32 %v2051_v17, %v1945_v43  ;;  %v2099_v43 = vpop.permute.xlu0 %1577 }
 0x3d3   :  { %v1508_v33 = vpop.permute.xlu1 %1507  ;;  %v1414_v60 = vmul.f32 %v1411_v59, %v1407_v6  ;;  %v1439_v49 = vmul.f32 %v1436_v11, %v1432_v47  ;;  %v1552_v14 = vmul.f32 %v1936_v34, %v1383_v9  ;;  %v1372_v2 = vmul.f32 %v1824_v13, %v2039_v19 }
 0x3d4   :  { %1444 = vrot.lane.b32.xlu0 %v1438_v24, %s1742_s23  ;;  %1396 = vrot.lane.b32.xlu1 %v1389_v26, %s1740_s2  ;;  %v1510_v38 = vmul.f32 %v1508_v33, %v1503_v10  ;;  %v1512_v48 = vmul.f32 %v1508_v33, %v1505_v27  ;;  %v1511_v4 = vmul.f32 %v1508_v33, %v1504_v50 }
 0x3d5   :  { %v1486_v45 = vmul.f32 %v1483_v25, %v1479_v40  ;;  %v1373_v8 = vmul.f32 %v1829_v15, %v2051_v17 }
 0x3d8   :  { %1468 = vrot.lane.b32.xlu0 %v1461_v42, %s1743_s24  ;;  %1419 = vrot.lane.b32.xlu1 %v1413_v30, %s1741_s22  ;;  %v1555_v51 = vpop.permute.xlu1 %1554 }
 0x3d9   :  { %v1558_v54 = vmul.f32 %v1555_v51, %v1551_v52  ;;  %v1557_v0 = vmul.f32 %v1555_v51, %v1550_v53  ;;  %v1559_v28 = vmul.f32 %v1555_v51, %v1552_v14 }
 0x3dc   :  { %1491 = vrot.lane.b32.xlu0 %v1485_v16, %s1744_s25  ;;  %1516 = vrot.lane.b32.xlu1 %v1510_v38, %s1745_s26 }
 0x3dd   :  { %v1377_v55 = vpop.permute.xlu1 %1376 }
 0x3de   :  { %v1379_v62 = vmul.f32 %v1377_v55, %v1372_v2  ;;  %v1380_v12 = vmul.f32 %v1377_v55, %v1373_v8  ;;  %v1698_v55 = vld [vmem:[%s2141_s0] sm:$0xff] }
 0x3e0   :  { %1448 = vrot.lane.b32.xlu0 %v1440_v39, %s1742_s23  ;;  %1540 = vrot.lane.b32.xlu1 %v1533_v61, %s1746_s27 }
 0x3e4   :  { %1495 = vrot.lane.b32.xlu0 %v1487_v32, %s1744_s25  ;;  %1423 = vrot.lane.b32.xlu1 %v1415_v46, %s1741_s22 }
 0x3e8   :  { %1421 = vrot.lane.b32.xlu0 %v1414_v60, %s1741_s22  ;;  %1520 = vrot.lane.b32.xlu1 %v1512_v48, %s1745_s26 }
 0x3ec   :  { %1542 = vrot.lane.b32.xlu0 %v1534_v37, %s1746_s27  ;;  %1446 = vrot.lane.b32.xlu1 %v1439_v49, %s1742_s23 }
 0x3f0   :  { %1518 = vrot.lane.b32.xlu0 %v1511_v4, %s1745_s26  ;;  %1493 = vrot.lane.b32.xlu1 %v1486_v45, %s1744_s25 }
 0x3f4   :  { %1565 = vrot.lane.b32.xlu0 %v1558_v54, %s1747_s28  ;;  %1563 = vrot.lane.b32.xlu1 %v1557_v0, %s1747_s28 }
 0x3f8   :  { %1567 = vrot.lane.b32.xlu1 %v1559_v28, %s1747_s28 }
 0x434   :  { %v1395_v56 = vpop.permute.xlu0 %1394 }
 0x439   :  { %v1467_v7 = vpop.permute.xlu1 %1466 }
 0x43e   :  { %v1539_v5 = vpop.permute.xlu1 %1538 }
 0x442   :  { %v1399_v35 = vpop.permute.xlu0 %1398  ;;  %v1471_v18 = vpop.permute.xlu1 %1470 }
 0x446   :  { %v1445_v20 = vpop.permute.xlu0 %1444  ;;  %v1397_v22 = vpop.permute.xlu1 %1396 }
 0x447   :  { %v1400_v11 = vsel %vm124_vm12, %v1395_v56, %v1397_v22  ;;  %v1401_v3 = vsel %vm124_vm12, %v1397_v22, %v1399_v35  ;;  %v1699_v56 = vld [vmem:[%s2141_s0 + $0x8] sm:$0xff] }
 0x448   :  { %v1404_v29 = vadd.f32 %v1400_v11, %v1379_v62  ;;  %v1405_v42 = vadd.f32 %v1401_v3, %v1380_v12 }
 0x44a   :  { %v1469_v58 = vpop.permute.xlu0 %1468  ;;  %v1420_v23 = vpop.permute.xlu1 %1419 }
 0x44b   :  { %v1472_v10 = vsel %vm221_vm15, %v1467_v7, %v1469_v58  ;;  %v1473_v38 = vsel %vm221_vm15, %v1469_v58, %v1471_v18 }
 0x44e   :  { %v1492_v59 = vpop.permute.xlu0 %1491  ;;  %v1517_v21 = vpop.permute.xlu1 %1516 }
 0x452   :  { %v1449_v34 = vpop.permute.xlu0 %1448  ;;  %v1541_v57 = vpop.permute.xlu1 %1540 }
 0x453   :  { %v1544_v40 = vsel %vm314_vm4, %v1539_v5, %v1541_v57 }
 0x456   :  { %v1496_v63 = vpop.permute.xlu0 %1495  ;;  %v1424_v1 = vpop.permute.xlu1 %1423 }
 0x45a   :  { %v1422_v9 = vpop.permute.xlu0 %1421  ;;  %v1521_v24 = vpop.permute.xlu1 %1520 }
 0x45b   :  { %v1425_v25 = vsel %vm161_vm13, %v1420_v23, %v1422_v9  ;;  %v1426_v26 = vsel %vm161_vm13, %v1422_v9, %v1424_v1 }
 0x45c   :  { %v1429_v31 = vadd.f32 %v1425_v25, %v1404_v29  ;;  %v1430_v13 = vadd.f32 %v1426_v26, %v1405_v42 }
 0x45e   :  { %v1543_v30 = vpop.permute.xlu0 %1542  ;;  %v1447_v19 = vpop.permute.xlu1 %1446 }
 0x45f   :  { %v1450_v15 = vsel %vm198_vm14, %v1445_v20, %v1447_v19  ;;  %v1451_v17 = vsel %vm198_vm14, %v1447_v19, %v1449_v34  ;;  %v1545_v4 = vsel %vm314_vm4, %v1541_v57, %v1543_v30 }
 0x460   :  { %v1454_v33 = vadd.f32 %v1450_v15, %v1429_v31  ;;  %v1455_v36 = vadd.f32 %v1451_v17, %v1430_v13 }
 0x462   :  { %v1519_v16 = vpop.permute.xlu0 %1518  ;;  %v1494_v39 = vpop.permute.xlu1 %1493  ;;  %v1476_v44 = vadd.f32 %v1472_v10, %v1454_v33  ;;  %v1477_v61 = vadd.f32 %v1473_v38, %v1455_v36 }
 0x463   :  { %v1497_v41 = vsel %vm256_vm2, %v1492_v59, %v1494_v39  ;;  %v1498_v32 = vsel %vm256_vm2, %v1494_v39, %v1496_v63  ;;  %v1522_v27 = vsel %vm291_vm3, %v1517_v21, %v1519_v16  ;;  %v1523_v60 = vsel %vm291_vm3, %v1519_v16, %v1521_v24 }
 0x464   :  { %v1501_v6 = vadd.f32 %v1497_v41, %v1476_v44  ;;  %v1502_v46 = vadd.f32 %v1498_v32, %v1477_v61 }
 0x466   :  { %v1526_v47 = vadd.f32 %v1522_v27, %v1501_v6  ;;  %v1527_v48 = vadd.f32 %v1523_v60, %v1502_v46  ;;  %v1564_v37 = vpop.permute.xlu1 %1563  ;;  %v1566_v49 = vpop.permute.xlu0 %1565 }
 0x467   :  { %v1569_v51 = vsel %vm349_vm5, %v1564_v37, %v1566_v49 }
 0x468   :  { %v1548_v50 = vadd.f32 %v1544_v40, %v1526_v47  ;;  %v1549_v53 = vadd.f32 %v1545_v4, %v1527_v48 }
 0x46a   :  { %v1573_v45 = vadd.f32 %v1569_v51, %v1548_v50  ;;  %v1568_v52 = vpop.permute.xlu1 %1567 }
 0x46b   :  { %v1570_v54 = vsel %vm349_vm5, %v1566_v49, %v1568_v52 }
 0x46c   :  { %v1580_v0 = vadd.f32 %v2099_v43, %v1573_v45  ;;  %v1574_v14 = vadd.f32 %v1570_v54, %v1549_v53 }
 0x46e   :  { %v1581_v28 = vadd.f32 %v2099_v43, %v1574_v14  ;;  %v1582_v7 = vadd.f32 %v1698_v55, %v1580_v0 }
 0x470   :  { %v1583_v5 = vadd.f32 %v1699_v56, %v1581_v28  ;;  %1584 = vst [vmem:[#allocation3] sm:$0xff] %v1582_v7 }
 0x472   :  { %1585 = vst [vmem:[#allocation3 + $0x8] sm:$0xff] %v1583_v5 }
 0x473   :  { %1711 = shalt.err (!%p1708_p4)
}
 0x474   :  { %s1712_s2 = scalar_lea.hbm %s2150_s9, 256 }
 0x475   :  { %p1713_p5 = scmp.ne.s32.totalorder %s2150_s9, %s1712_s2  ;;  %p1716_p6 = scmp.lt.u32.totalorder %s1712_s2, %s2150_s9 }
 0x477   :  { %p1718_p7 = pnand %p1716_p6, %p1713_p5 }
 0x479   :  { %1721 = shalt.err (!%p1718_p7)
}
 0x47a   :  { %1595 = dma.vmem_to_hbm [thread:$0]  %s1593_s8, 256, %s2150_s9, [#allocation4]  }
 0x47b   :  { %1722 = dma.done.wait [#allocation4], 256  }
 0x47c   :  { %1723 = vsyncadd [#allocation4], 4294967040 }
 0x47d   :  { %1599 = vsyncpa [#allocation4], 1 }

</bundles_post_ra>
